<compile_context>
chip_gen: v6e
topology: v6e:2x2x1
jax: 0.10.0
libtpu: 0.0.40
codegen_flags: <defaults>
</compile_context>

<pallas_src>
import jax
import jax.numpy as jnp
from jax.experimental import pallas as pl
from jax.experimental.pallas import tpu as pltpu


OBS_DIM = 4    # cartpole state: [x, x_dot, theta, theta_dot]
LANE = 128     # TPU vreg lane width
TB_MAX = 2048  # max batch-tile width (lanes) per grid step


def _controller_kernel(params_ref, xT_ref, o_ref):
    # params_ref: (8,) f32 SMEM  -> [w0, w1, w2, w3, bias, lo, hi, pad]
    # xT_ref:     (OBS_DIM, TB) f32 VMEM  (features on sublanes, batch on lanes)
    # o_ref:      (1, TB) f32 VMEM        (lane-dense output)
    w0 = params_ref[0]
    w1 = params_ref[1]
    w2 = params_ref[2]
    w3 = params_ref[3]
    b = params_ref[4]
    lo = params_ref[5]
    hi = params_ref[6]

    x = xT_ref[...]                        # (OBS_DIM, TB)
    # 4 VPU scalar-broadcast FMAs replace an MXU (B,4)x(4,1) matmul.
    y = (w0 * x[0:1, :]
         + w1 * x[1:2, :]
         + w2 * x[2:3, :]
         + w3 * x[3:4, :]
         + b)                              # (1, TB)
    y = jnp.minimum(jnp.maximum(y, lo), hi)
    o_ref[...] = y.astype(o_ref.dtype)


def cartpole_controller_forward(x, weight, bias, min_action, max_action,
                                *, tb_max=TB_MAX):
    """x: (B, OBS_DIM) f32; weight: (1, OBS_DIM) f32 (== -K); bias: (1,) f32;
    min_action/max_action: (1,) f32.  Returns (B, 1) f32."""
    B, D = x.shape
    assert D == OBS_DIM and weight.shape == (1, OBS_DIM)

    # Pad batch up to a multiple of the lane width, then to a multiple of TB.
    B_pad = pl.cdiv(max(B, 1), LANE) * LANE
    TB = min(tb_max, B_pad)
    B_pad = pl.cdiv(B_pad, TB) * TB

    # Lane-dense transposed input (one-time layout plumbing in the wrapper).
    xT = jnp.zeros((OBS_DIM, B_pad), dtype=jnp.float32).at[:, :B].set(
        x.astype(jnp.float32).T)

    # Single packed SMEM scalar vector: [w0..w3, bias, lo, hi, 0].
    params = jnp.concatenate([
        weight.astype(jnp.float32)[0],
        bias.astype(jnp.float32).reshape(1),
        min_action.astype(jnp.float32).reshape(1),
        max_action.astype(jnp.float32).reshape(1),
        jnp.zeros((1,), dtype=jnp.float32),
    ])  # (8,)

    out = pl.pallas_call(
        _controller_kernel,
        out_shape=jax.ShapeDtypeStruct((1, B_pad), jnp.float32),
        grid=(B_pad // TB,),
        in_specs=[
            pl.BlockSpec(memory_space=pltpu.SMEM),              # packed scalars
            pl.BlockSpec((OBS_DIM, TB), lambda i: (0, i)),      # x^T tile
        ],
        out_specs=pl.BlockSpec((1, TB), lambda i: (0, i)),
        compiler_params=pltpu.CompilerParams(
            dimension_semantics=("parallel",)),                  # v7x megacore
    )(params, xT)

    # Back to the module's (B, 1) output shape.
    return out[0, :B].reshape(B, 1)


if __name__ == "__main__":
    # Deterministic parameter init (synthetic stand-in for the LQR gain K).
    # TODO(synk): LQR gain computation (ct.lqr / ct.place on the linearized
    # cartpole) has no Pallas equivalent; K is hard-coded deterministically.
    K = jnp.array([[-1.0, -2.1, 25.3, 5.7]], dtype=jnp.float32)  # (1, 4)
    fc_weight = -K                                               # (1, 4)
    fc_bias = jnp.zeros((1,), dtype=jnp.float32)
    min_action = jnp.array([-10.0], dtype=jnp.float32)           # action_space.low
    max_action = jnp.array([10.0], dtype=jnp.float32)            # action_space.high

    # Example batch of cartpole states.
    B = 8
    key = jax.random.PRNGKey(0)
    x = jax.random.normal(key, (B, OBS_DIM), dtype=jnp.float32)

    out = cartpole_controller_forward(x, fc_weight, fc_bias, min_action, max_action)
    out = jax.block_until_ready(out)

    # Reference check (plain JAX) mirroring the PyTorch forward.
    ref = jnp.clip(x @ fc_weight.T + fc_bias, min_action[0], max_action[0])
    assert out.shape == (B, 1)
    assert jnp.allclose(out, ref, atol=1e-5), (out, ref)

    print("KERNEL_OK")
</pallas_src>

<mosaic_0001>
module attributes {stable_mosaic.version = 11 : i64} {
  func.func @_controller_kernel(%arg0: i32, %arg1: memref<8xf32, #tpu.memory_space<smem>>, %arg2: memref<4x128xf32, #tpu.memory_space<vmem>>, %arg3: memref<1x128xf32, #tpu.memory_space<vmem>>) attributes {dimension_semantics = [#tpu.dimension_semantics<parallel>], iteration_bounds = array<i64: 1>, scalar_prefetch = 0 : i64, scratch_operands = 0 : i64, tpu.core_type = #tpu.core_type<tc>, window_params = [{transform_indices = @transform_0, window_bounds = array<i64: 8>}, {transform_indices = @transform_1, window_bounds = array<i64: 4, 128>}, {transform_indices = @transform_2, window_bounds = array<i64: 1, 128>}]} {
    %c0 = arith.constant 0 : index
    %0 = memref.load %arg1[%c0] : memref<8xf32, #tpu.memory_space<smem>>
    %c1 = arith.constant 1 : index
    %1 = memref.load %arg1[%c1] : memref<8xf32, #tpu.memory_space<smem>>
    %c2 = arith.constant 2 : index
    %2 = memref.load %arg1[%c2] : memref<8xf32, #tpu.memory_space<smem>>
    %c3 = arith.constant 3 : index
    %3 = memref.load %arg1[%c3] : memref<8xf32, #tpu.memory_space<smem>>
    %c4 = arith.constant 4 : index
    %4 = memref.load %arg1[%c4] : memref<8xf32, #tpu.memory_space<smem>>
    %c5 = arith.constant 5 : index
    %5 = memref.load %arg1[%c5] : memref<8xf32, #tpu.memory_space<smem>>
    %c6 = arith.constant 6 : index
    %6 = memref.load %arg1[%c6] : memref<8xf32, #tpu.memory_space<smem>>
    %c0_0 = arith.constant 0 : index
    %c0_1 = arith.constant 0 : index
    %7 = vector.load %arg2[%c0_0, %c0_1] : memref<4x128xf32, #tpu.memory_space<vmem>>, vector<4x128xf32>
    %8 = vector.extract_strided_slice %7 {offsets = [0, 0], sizes = [1, 128], strides = [1, 1]} : vector<4x128xf32> to vector<1x128xf32>
    %9 = vector.broadcast %0 : f32 to vector<1x128xf32>
    %10 = arith.mulf %9, %8 : vector<1x128xf32>
    %11 = vector.extract_strided_slice %7 {offsets = [1, 0], sizes = [1, 128], strides = [1, 1]} : vector<4x128xf32> to vector<1x128xf32>
    %12 = vector.broadcast %1 : f32 to vector<1x128xf32>
    %13 = arith.mulf %12, %11 : vector<1x128xf32>
    %14 = arith.addf %10, %13 : vector<1x128xf32>
    %15 = vector.extract_strided_slice %7 {offsets = [2, 0], sizes = [1, 128], strides = [1, 1]} : vector<4x128xf32> to vector<1x128xf32>
    %16 = vector.broadcast %2 : f32 to vector<1x128xf32>
    %17 = arith.mulf %16, %15 : vector<1x128xf32>
    %18 = arith.addf %14, %17 : vector<1x128xf32>
    %19 = vector.extract_strided_slice %7 {offsets = [3, 0], sizes = [1, 128], strides = [1, 1]} : vector<4x128xf32> to vector<1x128xf32>
    %20 = vector.broadcast %3 : f32 to vector<1x128xf32>
    %21 = arith.mulf %20, %19 : vector<1x128xf32>
    %22 = arith.addf %18, %21 : vector<1x128xf32>
    %23 = vector.broadcast %4 : f32 to vector<1x128xf32>
    %24 = arith.addf %22, %23 : vector<1x128xf32>
    %25 = vector.broadcast %5 : f32 to vector<1x128xf32>
    %26 = arith.maximumf %24, %25 : vector<1x128xf32>
    %27 = vector.broadcast %6 : f32 to vector<1x128xf32>
    %28 = arith.minimumf %26, %27 : vector<1x128xf32>
    %c0_2 = arith.constant 0 : index
    %c0_3 = arith.constant 0 : index
    %29 = vector.load %arg3[%c0_2, %c0_3] : memref<1x128xf32, #tpu.memory_space<vmem>>, vector<1x128xf32>
    tpu.vector_store %arg3[%c0_2, %c0_3], %28 {strides = array<i32>} : memref<1x128xf32, #tpu.memory_space<vmem>>, vector<1x128xf32>,
    return
  }
  func.func @transform_0(%arg0: i32) -> i32 {
    %c0_i32 = arith.constant 0 : i32
    %c0_i32_0 = arith.constant 0 : i32
    return %c0_i32 : i32
  }
  func.func @transform_1(%arg0: i32) -> (i32, i32) {
    %c0_i32 = arith.constant 0 : i32
    %c0_i32_0 = arith.constant 0 : i32
    return %c0_i32, %arg0 : i32, i32
  }
  func.func @transform_2(%arg0: i32) -> (i32, i32) {
    %c0_i32 = arith.constant 0 : i32
    %c0_i32_0 = arith.constant 0 : i32
    return %c0_i32, %arg0 : i32, i32
  }
}

</mosaic_0001>

<bundles_post_ra>
// kernel: tpu_custom_call.1
= control target key start
LH: loop header
LB: loop body
LE: loop exit
PB: predicated region body
PF: predicated region fallthrough
CT: control target
= control target key end

     0   :  { %7 = vsyncpa [#allocation5], 0  ;;  %s176_s0 = inlined_call_operand.hbm [shape: f32[8], index: 0, kind: input, shape index: {}]   ;;  %s177_s1 = inlined_call_operand.hbm [shape: f32[4,128], index: 1, kind: input, shape index: {}]   ;;  %s178_s2 = inlined_call_operand.hbm [shape: f32[1,128], index: 2, kind: output, shape index: {}]  }
   0x1   :  { %8 = vsyncpa [#allocation3], 0 }
   0x2   :  { %9 = vsyncpa [#allocation4], 0  ;;  %s149_s9 = smov [#allocation2]   ;;  %s150_s12 = smov [#allocation6]  }
   0x3   :  { %17 = dma.hbm_to_smem %s176_s0, 16, %s149_s9, [#allocation5]  }
   0x4   :  { %s24_s13 = sshll.u32 %s150_s12, 4  ;;  %s25_s13 = int_to_ptr.vmem [resolvable:$true] %s24_s13 }
   0x5   :  { %s111_s14 = scalar_lea.vmem %s25_s13, 64  ;;  %p116_p1 = scmp.lt.s32.totalorder %s25_s13, %s25_s13 }
   0x6   :  { %p112_p0 = scmp.ne.s32.totalorder %s25_s13, %s111_s14  ;;  %p117_p2 = scmp.lt.s32.totalorder %s111_s14, %s111_s14 }
   0x8   :  { %p118_p3 = por %p117_p2, %p116_p1 }
   0xa   :  { %p119_p4 = pnand %p118_p3, %p112_p0 }
   0xc   :  { %122 = shalt.err (!%p119_p4)
}
   0xd   :  { %27 = dma.hbm_to_vmem [thread:$0]  %s177_s1, 64, %s25_s13, [#allocation3]  }
   0xe   :  { %143 = dma.done.wait [#allocation5], 16  }
   0xf   :  { %144 = vsyncadd [#allocation5], 4294967280 }
  0x10   :  { %145 = dma.done.wait [#allocation3], 64  }
  0x11   :  { %146 = vsyncadd [#allocation3], 4294967232 }
  0x12   :  { %34 = sfence }
  0x13   :  { %s35_s0 = sld [smem:[#allocation2]]  ;;  %v42_v0 = vld [vmem:[#allocation6] sm:$0xf]  ;;  %s151_s22 = smov [#allocation7]  }
  0x14   :  { %s86_s17 = sld [smem:[#allocation2 + $0x1]]  ;;  %s76_s23 = sshll.u32 %s151_s22, 4  ;;  %s77_s23 = int_to_ptr.vmem [resolvable:$true] %s76_s23 }
  0x15   :  { %s87_s18 = sld [smem:[#allocation2 + $0x2]]  ;;  %s123_s24 = scalar_lea.vmem %s77_s23, 16 }
  0x16   :  { %s88_s19 = sld [smem:[#allocation2 + $0x3]]  ;;  %p124_p5 = scmp.ne.s32.totalorder %s77_s23, %s123_s24 }
  0x17   :  { %s89_s20 = sld [smem:[#allocation2 + $0x4]]  ;;  %s127_s25 = scalar_lea.vmem %s77_s23, 32 }
  0x18   :  { %s90_s21 = sld [smem:[#allocation2 + $0x5]]  ;;  %p128_p6 = scmp.lt.s32.totalorder %s77_s23, %s77_s23 }
  0x19   :  { %v43_v1 = vstv %s35_s0  ;;  %s91_s1 = sld [smem:[#allocation2 + $0x6]]  ;;  %p129_p7 = scmp.lt.s32.totalorder %s127_s25, %s123_s24 }
  0x1a   :  { %v45_v2 = vstv %s86_s17  ;;  %v44_v3 = vmul.f32 %v43_v1, %v42_v0 }
  0x1b   :  { %v46_v4 = vmul.f32 %v45_v2, %v42_v0  ;;  %v51_v5 = vstv %s87_s18  ;;  %p130_p8 = por %p129_p7, %p128_p6 }
  0x1c   :  { %v52_v6 = vmul.f32 %v51_v5, %v42_v0  ;;  %v57_v7 = vstv %s88_s19 }
  0x1d   :  { %v48_v8 = vrot.slane %v46_v4, 1  ;;  %v58_v9 = vmul.f32 %v57_v7, %v42_v0  ;;  %v63_v14 = vstv %s89_s20  ;;  %p131_p9 = pnand %p130_p8, %p124_p5 }
  0x1e   :  { %v54_v10 = vrot.slane %v52_v6, 2  ;;  %v65_v16 = vstv %s90_s21 }
  0x1f   :  { %v50_v11 = vadd.f32 %v48_v8, %v44_v3  ;;  %v60_v12 = vrot.slane %v58_v9, 3  ;;  %v67_v18 = vstv %s91_s1 }
  0x21   :  { %v56_v13 = vadd.f32 %v54_v10, %v50_v11 }
  0x23   :  { %v62_v15 = vadd.f32 %v60_v12, %v56_v13 }
  0x25   :  { %v64_v17 = vadd.f32 %v63_v14, %v62_v15 }
  0x27   :  { %v66_v19 = vmax.f32 %v64_v17, %v65_v16 }
  0x29   :  { %v68_v20 = vmin.f32 %v66_v19, %v67_v18 }
  0x2b   :  { %69 = vst [vmem:[#allocation7] sm:$0x1] %v68_v20 }
  0x2c   :  { %134 = shalt.err (!%p131_p9)
}
  0x2d   :  { %79 = dma.vmem_to_hbm [thread:$0]  %s77_s23, 16, %s178_s2, [#allocation4]  }
  0x2e   :  { %147 = dma.done.wait [#allocation4], 16  }
  0x2f   :  { %148 = vsyncadd [#allocation4], 4294967280 }
  0x30   :  { %83 = vsyncpa [#allocation3], 1 }
  0x31   :  { %84 = vsyncpa [#allocation4], 1 }
  0x32   :  { %85 = vsyncpa [#allocation5], 1 }

</bundles_post_ra>
